<compile_context>
chip_gen: v6e
topology: v6e:2x2x1
jax: 0.10.0
libtpu: 0.0.40
codegen_flags: <defaults>
</compile_context>

<pallas_src>
import functools

import jax
import jax.numpy as jnp
from jax import lax
from jax.experimental import pallas as pl
from jax.experimental.pallas import tpu as pltpu


def temporal_block_kernel(*refs, K, dilation, P, T, NB, Cin, Cout,
                          has_downsample, cdtype):
    if has_downsample:
        (x_ref, w1_ref, b1_ref, w2_ref, b2_ref, wd_ref, bd_ref, o_ref) = refs
    else:
        (x_ref, w1_ref, b1_ref, w2_ref, b2_ref, o_ref) = refs

    # x_ref block: (NB, Cin, T) float32, channels-first: T on the lane axis.
    xs = [x_ref[b] for b in range(NB)]          # NB x (Cin, T), static indices

    def shift_right(v, z):
        # causal shift: out[:, t] = v[:, t - z], zero-filled on the left, keep T lanes.
        if z == 0:
            return v
        return jnp.concatenate(
            [jnp.zeros((v.shape[0], z), v.dtype), v[:, :T - z]], axis=1)

    def im2col(segs):
        # segs: NB tiles of (C, T) -> (K*C, NB*T).  Row block k holds each segment
        # shifted right by (P - k*dilation) lanes, segments shifted INDEPENDENTLY:
        # exactly "left-pad by P, take tap k*dilation, keep first T" == causal
        # dilated conv + Chomp1d, with no cross-batch leakage.
        rows = []
        for k in range(K):                       # K, NB are small and static
            z = P - k * dilation
            shifted = [shift_right(s, z) for s in segs]
            rows.append(jnp.concatenate(shifted, axis=1) if NB > 1 else shifted[0])
        return jnp.concatenate(rows, axis=0) if K > 1 else rows[0]

    # ---- conv1 (causal, dilated): one MXU matmul covering all NB batch elements ----
    h = jnp.dot(w1_ref[...], im2col(xs).astype(cdtype),
                preferred_element_type=jnp.float32)            # (Cout, NB*T) f32
    h = jnp.maximum(h + b1_ref[...], 0.0)        # bias (Cout,1) broadcasts over lanes
    # dropout1: identity (eval)

    # ---- conv2 (causal, dilated) on h: re-split into per-batch lane segments ----
    hs = [h[:, b * T:(b + 1) * T] for b in range(NB)]
    out = jnp.dot(w2_ref[...], im2col(hs).astype(cdtype),
                  preferred_element_type=jnp.float32)          # (Cout, NB*T) f32
    out = jnp.maximum(out + b2_ref[...], 0.0)
    # dropout2: identity (eval)

    # ---- residual branch + final ReLU, lane-dense (Cout, T) stores ----
    if has_downsample:
        x_slab = jnp.concatenate(xs, axis=1) if NB > 1 else xs[0]   # (Cin, NB*T)
        res = jnp.dot(wd_ref[...], x_slab.astype(cdtype),
                      preferred_element_type=jnp.float32) + bd_ref[...]
        y = jnp.maximum(out + res, 0.0)
        for b in range(NB):
            o_ref[b] = y[:, b * T:(b + 1) * T]
    else:
        # Cin == Cout: identity residual, exact f32, no downsample weights / matmul.
        for b in range(NB):
            o_ref[b] = jnp.maximum(out[:, b * T:(b + 1) * T] + xs[b], 0.0)


def _pick_batch_block(B, cap=8):
    """Largest divisor of B that is <= cap (keeps VMEM small and unrolls short)."""
    nb = 1
    for d in range(1, min(B, cap) + 1):
        if B % d == 0:
            nb = d
    return nb


def temporal_block_forward(x, params, *, kernel_size, dilation,
                           compute_dtype=jnp.bfloat16):
    """x: (B, Cin, T) float32 (PyTorch NCW).  Returns (B, Cout, T) float32."""
    w1, b1, w2, b2, wd, bd = params   # w1:(Cout,Cin,K) w2:(Cout,Cout,K) wd:(Cout,Cin)|None
    B, Cin, T = x.shape
    Cout = w1.shape[0]
    K = kernel_size
    P = (K - 1) * dilation
    has_downsample = wd is not None
    NB = _pick_batch_block(B)

    # Flatten conv weights for the im2col matmul: W[co, k*C + ci] = w[co, ci, k].
    w1_flat = jnp.transpose(w1, (0, 2, 1)).reshape(Cout, K * Cin).astype(compute_dtype)
    w2_flat = jnp.transpose(w2, (0, 2, 1)).reshape(Cout, K * Cout).astype(compute_dtype)
    b1_c = b1.reshape(Cout, 1).astype(jnp.float32)
    b2_c = b2.reshape(Cout, 1).astype(jnp.float32)

    in_specs = [
        pl.BlockSpec((NB, Cin, T), lambda g: (g, 0, 0)),         # x (NCW, no wrapper pad)
        pl.BlockSpec((Cout, K * Cin), lambda g: (0, 0)),         # w1 (VMEM-resident)
        pl.BlockSpec((Cout, 1), lambda g: (0, 0)),               # b1
        pl.BlockSpec((Cout, K * Cout), lambda g: (0, 0)),        # w2 (VMEM-resident)
        pl.BlockSpec((Cout, 1), lambda g: (0, 0)),               # b2
    ]
    args = [x.astype(jnp.float32), w1_flat, b1_c, w2_flat, b2_c]
    if has_downsample:
        in_specs += [pl.BlockSpec((Cout, Cin), lambda g: (0, 0)),
                     pl.BlockSpec((Cout, 1), lambda g: (0, 0))]
        args += [wd.astype(compute_dtype), bd.reshape(Cout, 1).astype(jnp.float32)]

    kernel = functools.partial(
        temporal_block_kernel, K=K, dilation=dilation, P=P, T=T, NB=NB,
        Cin=Cin, Cout=Cout, has_downsample=has_downsample, cdtype=compute_dtype)

    out = pl.pallas_call(
        kernel,
        out_shape=jax.ShapeDtypeStruct((B, Cout, T), jnp.float32),
        grid_spec=pltpu.PrefetchScalarGridSpec(
            num_scalar_prefetch=0,
            grid=(B // NB,),
            in_specs=in_specs,
            out_specs=pl.BlockSpec((NB, Cout, T), lambda g: (g, 0, 0)),
        ),
        compiler_params=pltpu.CompilerParams(
            dimension_semantics=("parallel",),
            # Whole-sequence blocks: fits easily at these shapes; tile T (with a
            # P-column halo) for long sequences (v7x VMEM is 64 MiB physical).
            vmem_limit_bytes=32 * 1024 * 1024,
        ),
    )(*args)
    return out


def make_params(key, n_inputs, n_outputs, kernel_size):
    """Synthetic parameters matching the module's shapes (weight_norm folded)."""
    ks = jax.random.split(key, 6)
    v1 = 0.01 * jax.random.normal(ks[0], (n_outputs, n_inputs, kernel_size), jnp.float32)
    g1 = jnp.sqrt(jnp.sum(v1 * v1, axis=(1, 2), keepdims=True))
    w1 = g1 * v1 / jnp.sqrt(jnp.sum(v1 * v1, axis=(1, 2), keepdims=True))
    b1 = 0.01 * jax.random.normal(ks[1], (n_outputs,), jnp.float32)

    v2 = 0.01 * jax.random.normal(ks[2], (n_outputs, n_outputs, kernel_size), jnp.float32)
    g2 = jnp.sqrt(jnp.sum(v2 * v2, axis=(1, 2), keepdims=True))
    w2 = g2 * v2 / jnp.sqrt(jnp.sum(v2 * v2, axis=(1, 2), keepdims=True))
    b2 = 0.01 * jax.random.normal(ks[3], (n_outputs,), jnp.float32)

    if n_inputs != n_outputs:
        wd = 0.01 * jax.random.normal(ks[4], (n_outputs, n_inputs), jnp.float32)  # 1x1 conv
        bd = 0.01 * jax.random.normal(ks[5], (n_outputs,), jnp.float32)
    else:
        wd, bd = None, None            # identity residual: no matmul, no weight DMA
    return (w1, b1, w2, b2, wd, bd)


def reference_forward(x, params, *, kernel_size, dilation):
    """Pure-JAX reference via lax.conv_general_dilated (causal left padding)."""
    w1, b1, w2, b2, wd, bd = params
    P = (kernel_size - 1) * dilation
    dn = ('NCH', 'OIH', 'NCH')

    def causal_conv(inp, w, b):
        y = lax.conv_general_dilated(inp, w, window_strides=(1,), padding=[(P, 0)],
                                     rhs_dilation=(dilation,), dimension_numbers=dn)
        return y + b[None, :, None]

    h = jnp.maximum(causal_conv(x, w1, b1), 0.0)
    out = jnp.maximum(causal_conv(h, w2, b2), 0.0)
    if wd is None:
        res = x
    else:
        res = lax.conv_general_dilated(x, wd[:, :, None], window_strides=(1,),
                                       padding=[(0, 0)], dimension_numbers=dn)
        res = res + bd[None, :, None]
    return jnp.maximum(out + res, 0.0)


if __name__ == "__main__":
    kernel_size, stride = 3, 1
    key = jax.random.PRNGKey(0)
    k1, k2, k3, k4 = jax.random.split(key, 4)

    # --- case 1: Cin != Cout -> 1x1-conv downsample on the residual branch, dilation=1 ---
    B, Cin, Cout, T = 2, 4, 8, 128
    dil1 = 1
    x1 = jax.random.normal(k1, (B, Cin, T), jnp.float32)
    p1 = make_params(k2, Cin, Cout, kernel_size)
    ref1 = reference_forward(x1, p1, kernel_size=kernel_size, dilation=dil1)

    o1_f32 = jax.block_until_ready(temporal_block_forward(
        x1, p1, kernel_size=kernel_size, dilation=dil1, compute_dtype=jnp.float32))
    assert o1_f32.shape == (B, Cout, T)
    assert jnp.allclose(o1_f32, ref1, atol=1e-5, rtol=1e-5), "case1 f32 mismatch"

    o1_bf16 = jax.block_until_ready(temporal_block_forward(
        x1, p1, kernel_size=kernel_size, dilation=dil1))          # default: bf16 matmuls
    assert jnp.allclose(o1_bf16, ref1, atol=1e-2, rtol=1e-2), "case1 bf16 mismatch"

    # --- case 2: Cin == Cout -> identity residual (downsample matmul skipped), dilation=2 ---
    Cio, dil2 = 8, 2
    x2 = jax.random.normal(k3, (B, Cio, T), jnp.float32)
    p2 = make_params(k4, Cio, Cio, kernel_size)
    ref2 = reference_forward(x2, p2, kernel_size=kernel_size, dilation=dil2)

    o2_f32 = jax.block_until_ready(temporal_block_forward(
        x2, p2, kernel_size=kernel_size, dilation=dil2, compute_dtype=jnp.float32))
    assert jnp.allclose(o2_f32, ref2, atol=1e-5, rtol=1e-5), "case2 f32 mismatch"

    o2_bf16 = jax.block_until_ready(temporal_block_forward(
        x2, p2, kernel_size=kernel_size, dilation=dil2))
    assert jnp.allclose(o2_bf16, ref2, atol=1e-2, rtol=1e-2), "case2 bf16 mismatch"

    print("KERNEL_OK")
</pallas_src>

<mosaic_0001>
module attributes {stable_mosaic.version = 11 : i64} {
  func.func @temporal_block_kernel(%arg0: i32, %arg1: memref<2x4x128xf32, #tpu.memory_space<vmem>>, %arg2: memref<8x12xf32, #tpu.memory_space<vmem>>, %arg3: memref<8x1xf32, #tpu.memory_space<vmem>>, %arg4: memref<8x24xf32, #tpu.memory_space<vmem>>, %arg5: memref<8x1xf32, #tpu.memory_space<vmem>>, %arg6: memref<8x4xf32, #tpu.memory_space<vmem>>, %arg7: memref<8x1xf32, #tpu.memory_space<vmem>>, %arg8: memref<2x8x128xf32, #tpu.memory_space<vmem>>) attributes {dimension_semantics = [#tpu.dimension_semantics<parallel>], iteration_bounds = array<i64: 1>, scalar_prefetch = 0 : i64, scratch_operands = 0 : i64, tpu.core_type = #tpu.core_type<tc>, window_params = [{transform_indices = @transform_0, window_bounds = array<i64: 2, 4, 128>}, {pipeline_mode = #tpu.pipeline_mode<synchronous>, transform_indices = @transform_1, window_bounds = array<i64: 8, 12>}, {pipeline_mode = #tpu.pipeline_mode<synchronous>, transform_indices = @transform_2, window_bounds = array<i64: 8, 1>}, {pipeline_mode = #tpu.pipeline_mode<synchronous>, transform_indices = @transform_3, window_bounds = array<i64: 8, 24>}, {pipeline_mode = #tpu.pipeline_mode<synchronous>, transform_indices = @transform_4, window_bounds = array<i64: 8, 1>}, {pipeline_mode = #tpu.pipeline_mode<synchronous>, transform_indices = @transform_5, window_bounds = array<i64: 8, 4>}, {pipeline_mode = #tpu.pipeline_mode<synchronous>, transform_indices = @transform_6, window_bounds = array<i64: 8, 1>}, {transform_indices = @transform_7, window_bounds = array<i64: 2, 8, 128>}]} {
    %c0 = arith.constant 0 : index
    %c0_0 = arith.constant 0 : index
    %c0_1 = arith.constant 0 : index
    %0 = vector.load %arg1[%c0, %c0_0, %c0_1] : memref<2x4x128xf32, #tpu.memory_space<vmem>>, vector<1x4x128xf32>
    %1 = vector.shape_cast %0 : vector<1x4x128xf32> to vector<4x128xf32>
    %c1 = arith.constant 1 : index
    %c0_2 = arith.constant 0 : index
    %c0_3 = arith.constant 0 : index
    %2 = vector.load %arg1[%c1, %c0_2, %c0_3] : memref<2x4x128xf32, #tpu.memory_space<vmem>>, vector<1x4x128xf32>
    %3 = vector.shape_cast %2 : vector<1x4x128xf32> to vector<4x128xf32>
    %c0_4 = arith.constant 0 : index
    %c0_5 = arith.constant 0 : index
    %4 = vector.load %arg2[%c0_4, %c0_5] : memref<8x12xf32, #tpu.memory_space<vmem>>, vector<8x12xf32>
    %cst = arith.constant 0.000000e+00 : f32
    %5 = vector.broadcast %cst : f32 to vector<4x2xf32>
    %6 = vector.extract_strided_slice %1 {offsets = [0, 0], sizes = [4, 126], strides = [1, 1]} : vector<4x128xf32> to vector<4x126xf32>
    %7 = tpu.concatenate %5, %6 in 1 : vector<4x2xf32>, vector<4x126xf32> -> vector<4x128xf32>
    %cst_6 = arith.constant 0.000000e+00 : f32
    %8 = vector.broadcast %cst_6 : f32 to vector<4x2xf32>
    %9 = vector.extract_strided_slice %3 {offsets = [0, 0], sizes = [4, 126], strides = [1, 1]} : vector<4x128xf32> to vector<4x126xf32>
    %10 = tpu.concatenate %8, %9 in 1 : vector<4x2xf32>, vector<4x126xf32> -> vector<4x128xf32>
    %11 = tpu.concatenate %7, %10 in 1 : vector<4x128xf32>, vector<4x128xf32> -> vector<4x256xf32>
    %cst_7 = arith.constant 0.000000e+00 : f32
    %12 = vector.broadcast %cst_7 : f32 to vector<4x1xf32>
    %13 = vector.extract_strided_slice %1 {offsets = [0, 0], sizes = [4, 127], strides = [1, 1]} : vector<4x128xf32> to vector<4x127xf32>
    %14 = tpu.concatenate %12, %13 in 1 : vector<4x1xf32>, vector<4x127xf32> -> vector<4x128xf32>
    %cst_8 = arith.constant 0.000000e+00 : f32
    %15 = vector.broadcast %cst_8 : f32 to vector<4x1xf32>
    %16 = vector.extract_strided_slice %3 {offsets = [0, 0], sizes = [4, 127], strides = [1, 1]} : vector<4x128xf32> to vector<4x127xf32>
    %17 = tpu.concatenate %15, %16 in 1 : vector<4x1xf32>, vector<4x127xf32> -> vector<4x128xf32>
    %18 = tpu.concatenate %14, %17 in 1 : vector<4x128xf32>, vector<4x128xf32> -> vector<4x256xf32>
    %19 = tpu.concatenate %1, %3 in 1 : vector<4x128xf32>, vector<4x128xf32> -> vector<4x256xf32>
    %20 = tpu.concatenate %11, %18, %19 in 0 : vector<4x256xf32>, vector<4x256xf32>, vector<4x256xf32> -> vector<12x256xf32>
    %cst_9 = arith.constant dense<0.000000e+00> : vector<8x256xf32>
    %21 = tpu.matmul %4, %20, %cst_9 {dimension_numbers = #tpu.dot_dimension_numbers<[1], [0], [0], [1], [0, 0, 1, 1], [], []>} : vector<8x12xf32>, vector<12x256xf32>, vector<8x256xf32> -> vector<8x256xf32>
    %c0_10 = arith.constant 0 : index
    %c0_11 = arith.constant 0 : index
    %22 = vector.load %arg3[%c0_10, %c0_11] : memref<8x1xf32, #tpu.memory_space<vmem>>, vector<8x1xf32>
    %23 = vector.broadcast %22 : vector<8x1xf32> to vector<8x256xf32>
    %24 = arith.addf %21, %23 : vector<8x256xf32>
    %cst_12 = arith.constant 0.000000e+00 : f32
    %25 = vector.broadcast %cst_12 : f32 to vector<8x256xf32>
    %26 = arith.maximumf %24, %25 : vector<8x256xf32>
    %27 = vector.extract_strided_slice %26 {offsets = [0, 0], sizes = [8, 128], strides = [1, 1]} : vector<8x256xf32> to vector<8x128xf32>
    %28 = vector.extract_strided_slice %26 {offsets = [0, 128], sizes = [8, 128], strides = [1, 1]} : vector<8x256xf32> to vector<8x128xf32>
    %c0_13 = arith.constant 0 : index
    %c0_14 = arith.constant 0 : index
    %29 = vector.load %arg4[%c0_13, %c0_14] : memref<8x24xf32, #tpu.memory_space<vmem>>, vector<8x24xf32>
    %cst_15 = arith.constant 0.000000e+00 : f32
    %30 = vector.broadcast %cst_15 : f32 to vector<8x2xf32>
    %31 = vector.extract_strided_slice %27 {offsets = [0, 0], sizes = [8, 126], strides = [1, 1]} : vector<8x128xf32> to vector<8x126xf32>
    %32 = tpu.concatenate %30, %31 in 1 : vector<8x2xf32>, vector<8x126xf32> -> vector<8x128xf32>
    %cst_16 = arith.constant 0.000000e+00 : f32
    %33 = vector.broadcast %cst_16 : f32 to vector<8x2xf32>
    %34 = vector.extract_strided_slice %28 {offsets = [0, 0], sizes = [8, 126], strides = [1, 1]} : vector<8x128xf32> to vector<8x126xf32>
    %35 = tpu.concatenate %33, %34 in 1 : vector<8x2xf32>, vector<8x126xf32> -> vector<8x128xf32>
    %36 = tpu.concatenate %32, %35 in 1 : vector<8x128xf32>, vector<8x128xf32> -> vector<8x256xf32>
    %cst_17 = arith.constant 0.000000e+00 : f32
    %37 = vector.broadcast %cst_17 : f32 to vector<8x1xf32>
    %38 = vector.extract_strided_slice %27 {offsets = [0, 0], sizes = [8, 127], strides = [1, 1]} : vector<8x128xf32> to vector<8x127xf32>
    %39 = tpu.concatenate %37, %38 in 1 : vector<8x1xf32>, vector<8x127xf32> -> vector<8x128xf32>
    %cst_18 = arith.constant 0.000000e+00 : f32
    %40 = vector.broadcast %cst_18 : f32 to vector<8x1xf32>
    %41 = vector.extract_strided_slice %28 {offsets = [0, 0], sizes = [8, 127], strides = [1, 1]} : vector<8x128xf32> to vector<8x127xf32>
    %42 = tpu.concatenate %40, %41 in 1 : vector<8x1xf32>, vector<8x127xf32> -> vector<8x128xf32>
    %43 = tpu.concatenate %39, %42 in 1 : vector<8x128xf32>, vector<8x128xf32> -> vector<8x256xf32>
    %44 = tpu.concatenate %27, %28 in 1 : vector<8x128xf32>, vector<8x128xf32> -> vector<8x256xf32>
    %45 = tpu.concatenate %36, %43, %44 in 0 : vector<8x256xf32>, vector<8x256xf32>, vector<8x256xf32> -> vector<24x256xf32>
    %cst_19 = arith.constant dense<0.000000e+00> : vector<8x256xf32>
    %46 = tpu.matmul %29, %45, %cst_19 {dimension_numbers = #tpu.dot_dimension_numbers<[1], [0], [0], [1], [0, 0, 1, 1], [], []>} : vector<8x24xf32>, vector<24x256xf32>, vector<8x256xf32> -> vector<8x256xf32>
    %c0_20 = arith.constant 0 : index
    %c0_21 = arith.constant 0 : index
    %47 = vector.load %arg5[%c0_20, %c0_21] : memref<8x1xf32, #tpu.memory_space<vmem>>, vector<8x1xf32>
    %48 = vector.broadcast %47 : vector<8x1xf32> to vector<8x256xf32>
    %49 = arith.addf %46, %48 : vector<8x256xf32>
    %cst_22 = arith.constant 0.000000e+00 : f32
    %50 = vector.broadcast %cst_22 : f32 to vector<8x256xf32>
    %51 = arith.maximumf %49, %50 : vector<8x256xf32>
    %52 = tpu.concatenate %1, %3 in 1 : vector<4x128xf32>, vector<4x128xf32> -> vector<4x256xf32>
    %c0_23 = arith.constant 0 : index
    %c0_24 = arith.constant 0 : index
    %53 = vector.load %arg6[%c0_23, %c0_24] : memref<8x4xf32, #tpu.memory_space<vmem>>, vector<8x4xf32>
    %cst_25 = arith.constant dense<0.000000e+00> : vector<8x256xf32>
    %54 = tpu.matmul %53, %52, %cst_25 {dimension_numbers = #tpu.dot_dimension_numbers<[1], [0], [0], [1], [0, 0, 1, 1], [], []>} : vector<8x4xf32>, vector<4x256xf32>, vector<8x256xf32> -> vector<8x256xf32>
    %c0_26 = arith.constant 0 : index
    %c0_27 = arith.constant 0 : index
    %55 = vector.load %arg7[%c0_26, %c0_27] : memref<8x1xf32, #tpu.memory_space<vmem>>, vector<8x1xf32>
    %56 = vector.broadcast %55 : vector<8x1xf32> to vector<8x256xf32>
    %57 = arith.addf %54, %56 : vector<8x256xf32>
    %58 = arith.addf %51, %57 : vector<8x256xf32>
    %cst_28 = arith.constant 0.000000e+00 : f32
    %59 = vector.broadcast %cst_28 : f32 to vector<8x256xf32>
    %60 = arith.maximumf %58, %59 : vector<8x256xf32>
    %61 = vector.extract_strided_slice %60 {offsets = [0, 0], sizes = [8, 128], strides = [1, 1]} : vector<8x256xf32> to vector<8x128xf32>
    %c0_29 = arith.constant 0 : index
    %c0_30 = arith.constant 0 : index
    %c0_31 = arith.constant 0 : index
    %62 = vector.load %arg8[%c0_29, %c0_30, %c0_31] : memref<2x8x128xf32, #tpu.memory_space<vmem>>, vector<1x8x128xf32>
    %63 = vector.shape_cast %62 : vector<1x8x128xf32> to vector<8x128xf32>
    %64 = vector.shape_cast %61 : vector<8x128xf32> to vector<1x8x128xf32>
    tpu.vector_store %arg8[%c0_29, %c0_30, %c0_31], %64 {strides = array<i32>} : memref<2x8x128xf32, #tpu.memory_space<vmem>>, vector<1x8x128xf32>,
    %65 = vector.extract_strided_slice %60 {offsets = [0, 128], sizes = [8, 128], strides = [1, 1]} : vector<8x256xf32> to vector<8x128xf32>
    %c1_32 = arith.constant 1 : index
    %c0_33 = arith.constant 0 : index
    %c0_34 = arith.constant 0 : index
    %66 = vector.load %arg8[%c1_32, %c0_33, %c0_34] : memref<2x8x128xf32, #tpu.memory_space<vmem>>, vector<1x8x128xf32>
    %67 = vector.shape_cast %66 : vector<1x8x128xf32> to vector<8x128xf32>
    %68 = vector.shape_cast %65 : vector<8x128xf32> to vector<1x8x128xf32>
    tpu.vector_store %arg8[%c1_32, %c0_33, %c0_34], %68 {strides = array<i32>} : memref<2x8x128xf32, #tpu.memory_space<vmem>>, vector<1x8x128xf32>,
    return
  }
  func.func @transform_0(%arg0: i32) -> (i32, i32, i32) {
    %c0_i32 = arith.constant 0 : i32
    %c0_i32_0 = arith.constant 0 : i32
    %c0_i32_1 = arith.constant 0 : i32
    return %arg0, %c0_i32, %c0_i32_0 : i32, i32, i32
  }
  func.func @transform_1(%arg0: i32) -> (i32, i32) {
    %c0_i32 = arith.constant 0 : i32
    %c0_i32_0 = arith.constant 0 : i32
    %c0_i32_1 = arith.constant 0 : i32
    return %c0_i32, %c0_i32_0 : i32, i32
  }
  func.func @transform_2(%arg0: i32) -> (i32, i32) {
    %c0_i32 = arith.constant 0 : i32
    %c0_i32_0 = arith.constant 0 : i32
    %c0_i32_1 = arith.constant 0 : i32
    return %c0_i32, %c0_i32_0 : i32, i32
  }
  func.func @transform_3(%arg0: i32) -> (i32, i32) {
    %c0_i32 = arith.constant 0 : i32
    %c0_i32_0 = arith.constant 0 : i32
    %c0_i32_1 = arith.constant 0 : i32
    return %c0_i32, %c0_i32_0 : i32, i32
  }
  func.func @transform_4(%arg0: i32) -> (i32, i32) {
    %c0_i32 = arith.constant 0 : i32
    %c0_i32_0 = arith.constant 0 : i32
    %c0_i32_1 = arith.constant 0 : i32
    return %c0_i32, %c0_i32_0 : i32, i32
  }
  func.func @transform_5(%arg0: i32) -> (i32, i32) {
    %c0_i32 = arith.constant 0 : i32
    %c0_i32_0 = arith.constant 0 : i32
    %c0_i32_1 = arith.constant 0 : i32
    return %c0_i32, %c0_i32_0 : i32, i32
  }
  func.func @transform_6(%arg0: i32) -> (i32, i32) {
    %c0_i32 = arith.constant 0 : i32
    %c0_i32_0 = arith.constant 0 : i32
    %c0_i32_1 = arith.constant 0 : i32
    return %c0_i32, %c0_i32_0 : i32, i32
  }
  func.func @transform_7(%arg0: i32) -> (i32, i32, i32) {
    %c0_i32 = arith.constant 0 : i32
    %c0_i32_0 = arith.constant 0 : i32
    %c0_i32_1 = arith.constant 0 : i32
    return %arg0, %c0_i32, %c0_i32_0 : i32, i32, i32
  }
}

</mosaic_0001>

<bundles_post_ra>
// kernel: tpu_custom_call.1
= control target key start
LH: loop header
LB: loop body
LE: loop exit
PB: predicated region body
PF: predicated region fallthrough
CT: control target
= control target key end

     0   :  { %s401_s26 = smov 1   ;;  %s402_s27 = smov 2   ;;  %vm57_vm0 = vcmask 1043456   ;;  %v403_v2 = vmov 0.0   ;;  %s495_s0 = inlined_call_operand.vmem [shape: f32[2,4,128], index: 0, kind: input, shape index: {}]   ;;  %s496_s1 = inlined_call_operand.vmem [shape: f32[8,12], index: 1, kind: input, shape index: {}]   ;;  %s497_s2 = inlined_call_operand.vmem [shape: f32[8,1], index: 2, kind: input, shape index: {}]   ;;  %s498_s3 = inlined_call_operand.vmem [shape: f32[8,24], index: 3, kind: input, shape index: {}]   ;;  %s499_s4 = inlined_call_operand.vmem [shape: f32[8,1], index: 4, kind: input, shape index: {}]   ;;  %s500_s5 = inlined_call_operand.vmem [shape: f32[8,4], index: 5, kind: input, shape index: {}]   ;;  %s501_s6 = inlined_call_operand.vmem [shape: f32[8,1], index: 6, kind: input, shape index: {}]   ;;  %s502_s7 = inlined_call_operand.hbm [shape: f32[2,8,128], index: 7, kind: output, shape index: {}]  }
   0x1   :  { %v354_v0 = vld [vmem:[%s495_s0 + $0x4] sm:$0xf]  ;;  %v27_v1 = vld [vmem:[%s495_s0] sm:$0xf]  ;;  %138 = vmatprep.mubr.f32.mxu0 %v403_v2 }
   0x2   :  { %47 = vrot.lane.b32.xlu0 %v354_v0, %s401_s26  ;;  %38 = vrot.lane.b32.xlu1 %v354_v0, %s402_s27 }
   0x3   :  { %355 = vmatprep.subr.msk.mxu0 %vm57_vm0, %v354_v0 }
   0x4   :  { %12 = vsyncpa [#allocation3], 0  ;;  %356 = vmatpush1.msk.msra.mxu0 %vm57_vm0, %v27_v1  ;;  %v404_v3 = vmov 0   ;;  %240 = vmatprep.mubr.f32.mxu1 %v403_v2  ;;  %v60_v4 = vld [vmem:[%s497_s2] sm:$0xff]  ;;  %vm45_vm1 = vcmask 7168   ;;  %vm35_vm2 = vcmask 15360  }
   0x5   :  { %377 = vset.pattern.permute.xlu0 %v404_v3  ;;  %378 = vset.pattern.permute.xlu1 %v404_v3  ;;  %v30_v16 = vld [vmem:[%s496_s1] sm:$0xff]  ;;  %vm66_vm3 = vcmask 97280   ;;  %vm256_vm4 = vcmask 31744   ;;  %vm358_vm5 = vmneg %vm45_vm1  ;;  %vm172_vm7 = vcmask 195584  }
   0x6   :  { %42 = vrot.lane.b32.xlu0 %v27_v1, %s401_s26  ;;  %32 = vrot.lane.b32.xlu1 %v27_v1, %s402_s27  ;;  %v249_v20 = vld [vmem:[%s500_s5] sm:$0xff]  ;;  %vm362_vm6 = vmneg %vm35_vm2 }
   0x7   :  { %v166_v26 = vld [vmem:[%s499_s4] sm:$0xff] }
   0x8   :  { %v250_v27 = vld [vmem:[%s501_s6] sm:$0xff]  ;;  %s405_s6 = smov [#allocation2]  }
   0x9   :  { %v147_v31 = vld [vmem:[%s498_s3] sm:$0xff]  ;;  %s343_s14 = sshll.u32 %s405_s6, 4  ;;  %s344_s14 = int_to_ptr.vmem [resolvable:$true] %s343_s14 }
   0xa   :  { %63 = vperm.xlu0 %377, %v60_v4   ;;  %s379_s3 = scalar_lea.vmem %s344_s14, 256  ;;  %p384_p1 = scmp.lt.s32.totalorder %s344_s14, %s344_s14 }
   0xb   :  { %p380_p0 = scmp.ne.s32.totalorder %s344_s14, %s379_s3  ;;  %p385_p2 = scmp.lt.s32.totalorder %s379_s3, %s379_s3 }
   0xd   :  { %p386_p3 = por %p385_p2, %p384_p1 }
   0xf   :  { %p387_p4 = pnand %p386_p3, %p380_p0 }
  0x74   :  { %v48_v5 = vpop.permute.xlu0 %47  ;;  %v39_v6 = vpop.permute.xlu1 %38 }
  0x75   :  { %v50_v7 = vsel %vm45_vm1, 0.0, %v48_v5  ;;  %v41_v8 = vsel %vm35_vm2, 0.0, %v39_v6 }
  0x76   :  { %v54_v9 = vrot.slane %v50_v7, 4 }
  0x78   :  { %v43_v10 = vpop.permute.xlu0 %42  ;;  %v59_v11 = vsel %vm57_vm0, %v41_v8, %v54_v9  ;;  %v33_v12 = vpop.permute.xlu1 %32 }
  0x79   :  { %v46_v13 = vsel %vm45_vm1, 0.0, %v43_v10  ;;  %104 = vmatprep.subr.mxu0 %v59_v11  ;;  %v36_v14 = vsel %vm35_vm2, 0.0, %v33_v12 }
  0x7a   :  { %v53_v15 = vrot.slane %v46_v13, 4 }
  0x7c   :  { %v58_v17 = vsel %vm57_vm0, %v36_v14, %v53_v15 }
  0x7d   :  { %105 = vmatpush1.msra.mxu0 %v58_v17 }
  0x7e   :  { %357 = vmatmul.mubr.msk.f32.vlgmr.msra.gmra.mxu0 %vm66_vm3, %v30_v16  ;;  %367 = vmatprep.subr.msk.mxu0 %vm57_vm0, %v354_v0 }
  0x7f   :  { %368 = vmatpush1.msk.msra.mxu0 %vm57_vm0, %v27_v1  ;;  %324 = vmatprep.mubr.f32.mxu0 %v403_v2 }
  0x82   :  { %369 = vmatmul.mubr.msk.f32.vlgmr.msra.gmra.mxu0 %vm256_vm4, %v249_v20 }
  0x85   :  { %v64_v18 = vpop.permute.xlu0 %63 }
 0x13e   :  { %v140_v19 = vpop.f32.mrf.mxu0 }
 0x13f   :  { %v141_v21 = vadd.f32 %v140_v19, %v64_v18 }
 0x140   :  { %v142_v22 = vpop.f32.mrf.mxu0 }
 0x141   :  { %v145_v23 = vmax.f32 %v141_v21, 0.0  ;;  %v143_v24 = vadd.f32 %v142_v22, %v64_v18 }
 0x142   :  { %v326_v33 = vpop.f32.mrf.mxu0 }
 0x143   :  { %v146_v25 = vmax.f32 %v143_v24, 0.0  ;;  %158 = vrot.lane.b32.xlu1 %v145_v23, %s401_s26 }
 0x144   :  { %v328_v39 = vpop.f32.mrf.mxu0 }
 0x145   :  { %154 = vrot.lane.b32.xlu0 %v146_v25, %s402_s27  ;;  %202 = vmatprep.subr.mxu1 %v146_v25 }
 0x146   :  { %203 = vmatpush1.msra.mxu1 %v145_v23 }
 0x147   :  { %162 = vrot.lane.b32.xlu1 %v146_v25, %s401_s26 }
 0x149   :  { %169 = vperm.xlu0 %377, %v166_v26  }
 0x14b   :  { %149 = vrot.lane.b32.xlu1 %v145_v23, %s402_s27 }
 0x14f   :  { %253 = vperm.xlu1 %378, %v250_v27  }
 0x1b5   :  { %v159_v28 = vpop.permute.xlu1 %158 }
 0x1b7   :  { %v155_v30 = vpop.permute.xlu0 %154 }
 0x1b9   :  { %v163_v29 = vpop.permute.xlu1 %162 }
 0x1ba   :  { %359 = vmatprep.subr.msk.mxu1 %vm358_vm5, %v163_v29 }
 0x1bb   :  { %361 = vmatpush1.msk.msra.mxu1 %vm358_vm5, %v159_v28 }
 0x1bc   :  { %363 = vmatprep.subr.msk.mxu1 %vm362_vm6, %v155_v30 }
 0x1bd   :  { %v150_v32 = vpop.permute.xlu1 %149 }
 0x1be   :  { %365 = vmatpush1.msk.msra.mxu1 %vm362_vm6, %v150_v32 }
 0x1bf   :  { %366 = vmatmul.mubr.msk.f32.vlgmr.msra.gmra.mxu1 %vm172_vm7, %v147_v31 }
 0x1c4   :  { %v170_v35 = vpop.permute.xlu0 %169 }
 0x1ca   :  { %v254_v34 = vpop.permute.xlu1 %253 }
 0x1cb   :  { %v327_v38 = vadd.f32 %v326_v33, %v254_v34  ;;  %v329_v43 = vadd.f32 %v328_v39, %v254_v34 }
 0x27f   :  { %v242_v36 = vpop.f32.mrf.mxu1 }
 0x280   :  { %v243_v37 = vadd.f32 %v242_v36, %v170_v35 }
 0x281   :  { %v244_v40 = vpop.f32.mrf.mxu1 }
 0x282   :  { %v247_v41 = vmax.f32 %v243_v37, 0.0  ;;  %v245_v42 = vadd.f32 %v244_v40, %v170_v35 }
 0x284   :  { %v331_v44 = vadd.f32 %v327_v38, %v247_v41  ;;  %v248_v45 = vmax.f32 %v245_v42, 0.0 }
 0x286   :  { %v333_v46 = vmax.f32 %v331_v44, 0.0  ;;  %v332_v47 = vadd.f32 %v329_v43, %v248_v45 }
 0x288   :  { %335 = vst [vmem:[#allocation2] sm:$0xff] %v333_v46  ;;  %v334_v48 = vmax.f32 %v332_v47, 0.0 }
 0x28a   :  { %337 = vst [vmem:[#allocation2 + $0x8] sm:$0xff] %v334_v48 }
 0x28b   :  { %390 = shalt.err (!%p387_p4)
}
 0x28c   :  { %s406_s15 = smov 128   ;;  %s407_s16 = smov 8  }
 0x28d   :  { %349 = dma.vmem_to_hbm [thread:$0]  %s344_s14, 256, %s502_s7, [#allocation3], %s406_s15, %s406_s15, %s407_s16  }
 0x28e   :  { %399 = dma.done.wait [#allocation3], 256  }
 0x28f   :  { %400 = vsyncadd [#allocation3], 4294967040 }
 0x290   :  { %353 = vsyncpa [#allocation3], 1 }

</bundles_post_ra>
